<compile_context>
chip_gen: v7x
topology: tpu7x:2x2x1
jax: 0.10.0
libtpu: 0.0.40
codegen_flags: <defaults>
</compile_context>

<pallas_src>
import jax
import jax.numpy as jnp
from jax.experimental import pallas as pl
from jax.experimental.pallas import tpu as pltpu


def featurenet_kernel(x_ref, bat_ref,
                      w1_ref, b1_ref, w2_ref, b2_ref, w3_ref,
                      out_ref):
    """One (core, N-tile) grid step, channels-first.

    x_ref: [6, TN] bf16      bat_ref: [1, TN] i32 (padded cols carry id == B)
    w1: [s1, 6]  w2: [s2, s1]  w3: [s3, s2]  (bf16)   b1: [s1,1]  b2: [s2,1]  (f32)
    out_ref: [1, s3, B] f32 -- per-core running max of (w3 @ h2), resident across N-tiles.
    """
    i = pl.program_id(1)

    @pl.when(i == 0)
    def _init():
        out_ref[...] = jnp.full(out_ref.shape, -jnp.inf, dtype=out_ref.dtype)

    # 1x1 "convs" == per-point MLP on the MXU; every result is lane-dense over points.
    h = jnp.dot(w1_ref[...], x_ref[...], preferred_element_type=jnp.float32) + b1_ref[...]
    h = jnp.maximum(h, 0.0).astype(jnp.bfloat16)
    h = jnp.dot(w2_ref[...], h, preferred_element_type=jnp.float32) + b2_ref[...]
    h = jnp.maximum(h, 0.0).astype(jnp.bfloat16)
    h = jnp.dot(w3_ref[...], h, preferred_element_type=jnp.float32)   # [s3, TN]; b3 hoisted out

    # Per-batch masked max over the lane (point) axis, accumulated into the resident block.
    # TODO(synk): for large B, switch to a sorted-batch segment reduction with scalar-prefetched
    # offsets instead of the static B-pass additive-mask max.
    bidx = bat_ref[...]                       # [1, TN] i32
    num_batches = out_ref.shape[2]            # static, small
    neg_inf = jnp.float32(-jnp.inf)
    cols = []
    for b in range(num_batches):
        keep = jnp.where(bidx == b, jnp.float32(0.0), neg_inf)       # [1, TN]
        cols.append(jnp.max(h + keep, axis=-1, keepdims=True))       # [s3, 1]
    tile_max = jnp.concatenate(cols, axis=-1)                        # [s3, B]
    out_ref[...] = jnp.maximum(out_ref[...], tile_max[None])


def featurenet_forward(points, color, batch, params, num_batches,
                       *, tile_n=4096, num_cores=2):
    """Wrapper: layout prep (concat/transpose/pad) in plain JAX, hot path in one Pallas call."""
    N = points.shape[0]
    s1 = params["w1"].shape[0]
    s2 = params["w2"].shape[0]
    s3 = params["w3"].shape[0]

    def round_up(a, m):
        return (a + m - 1) // m * m

    # Lane-dim tile: multiple of 128, big enough to amortize per-step overhead, shrunk for tiny N.
    tn = min(tile_n, max(128, round_up(pl.cdiv(N, num_cores), 128)))
    tiles_per_core = pl.cdiv(N, num_cores * tn)
    n_pad = num_cores * tiles_per_core * tn

    x = jnp.concatenate([jnp.asarray(points, jnp.float32),
                         jnp.asarray(color, jnp.float32)], axis=-1)   # [N, 6]
    bat = jnp.asarray(batch, jnp.int32)
    if n_pad != N:
        pad = n_pad - N
        x = jnp.pad(x, ((0, pad), (0, 0)))
        # Padded points get an out-of-range batch id so they never contribute to the max.
        bat = jnp.pad(bat, (0, pad), constant_values=num_batches)

    xt = x.T.astype(jnp.bfloat16)          # [6, n_pad] channels-first, lane-dense
    bat = bat.reshape(1, n_pad)

    # Conv1d(k=1) weights are already [out, in] -> usable directly in channels-first form.
    w1 = params["w1"].astype(jnp.bfloat16)               # [s1, 6]
    w2 = params["w2"].astype(jnp.bfloat16)               # [s2, s1]
    w3 = params["w3"].astype(jnp.bfloat16)               # [s3, s2]
    b1 = params["b1"].reshape(-1, 1).astype(jnp.float32)  # [s1, 1]
    b2 = params["b2"].reshape(-1, 1).astype(jnp.float32)  # [s2, 1]

    grid = (num_cores, tiles_per_core)

    def col_map(c, i):       # point tiles: each core walks its own contiguous slice of N
        return (0, c * tiles_per_core + i)

    def w_map(c, i):         # weights/biases: one block, resident across the whole grid
        return (0, 0)

    in_specs = [
        pl.BlockSpec((6, tn), col_map),       # x (points+color), channels-first
        pl.BlockSpec((1, tn), col_map),       # batch ids
        pl.BlockSpec((s1, 6), w_map),         # w1
        pl.BlockSpec((s1, 1), w_map),         # b1
        pl.BlockSpec((s2, s1), w_map),        # w2
        pl.BlockSpec((s2, 1), w_map),         # b2
        pl.BlockSpec((s3, s2), w_map),        # w3
    ]
    out_specs = pl.BlockSpec((1, s3, num_batches), lambda c, i: (c, 0, 0))

    flops = 2 * n_pad * (6 * s1 + s1 * s2 + s2 * s3)
    bytes_accessed = (n_pad * (6 * 2 + 4)                         # bf16 x + i32 batch
                      + (6 * s1 + s1 * s2 + s2 * s3) * 2          # bf16 weights
                      + (s1 + s2) * 4                             # f32 biases
                      + num_cores * num_batches * s3 * 4)         # f32 partial outputs

    partials = pl.pallas_call(
        featurenet_kernel,
        out_shape=jax.ShapeDtypeStruct((num_cores, s3, num_batches), jnp.float32),
        grid=grid,
        in_specs=in_specs,
        out_specs=out_specs,
        compiler_params=pltpu.CompilerParams(
            dimension_semantics=("parallel", "arbitrary"),
            vmem_limit_bytes=32 * 1024 * 1024),
        cost_estimate=pl.CostEstimate(flops=flops, transcendentals=0,
                                      bytes_accessed=bytes_accessed),
    )(xt, bat, w1, b1, w2, b2, w3)

    # Combine per-core partials, then apply the hoisted conv3 bias and the scatter-onto-zeros
    # clamp (include_self=True -> max with 0); batches with no points come out as 0.
    feat = jnp.max(partials, axis=0).T                    # [B, s3] = max_n (w3 @ h2)
    return jnp.maximum(feat + params["b3"][None, :].astype(jnp.float32), 0.0)


def featurenet_reference(points, color, batch, params, num_batches):
    """Pure-JAX f32 reference for correctness checking."""
    x = jnp.concatenate([points, color], axis=-1).astype(jnp.float32)
    h = jax.nn.relu(x @ params["w1"].T + params["b1"])
    h = jax.nn.relu(h @ params["w2"].T + params["b2"])
    h = h @ params["w3"].T + params["b3"]
    out = jnp.full((num_batches, h.shape[1]), -jnp.inf, dtype=jnp.float32)
    out = out.at[batch].max(h)
    return jnp.maximum(out, 0.0)


def init_params(key, layer_sizes=(32, 128, 256), in_ch=6):
    """Deterministic init mimicking PyTorch Conv1d default (uniform +/- 1/sqrt(fan_in))."""
    s1, s2, s3 = layer_sizes
    dims = [(s1, in_ch), (s2, s1), (s3, s2)]
    params = {}
    for i, (cout, cin) in enumerate(dims, start=1):
        kw, kb, key = jax.random.split(key, 3)
        bound = 1.0 / jnp.sqrt(jnp.float32(cin))
        params[f"w{i}"] = jax.random.uniform(kw, (cout, cin), jnp.float32, -bound, bound)
        params[f"b{i}"] = jax.random.uniform(kb, (cout,), jnp.float32, -bound, bound)
    return params


if __name__ == "__main__":
    key = jax.random.PRNGKey(0)
    k_pts, k_col, k_par = jax.random.split(key, 3)

    N = 256          # number of points (small test; wrapper handles arbitrary N)
    B = 2            # number of batches (batch.max() + 1)
    layer_sizes = (32, 128, 256)

    points = jax.random.normal(k_pts, (N, 3), jnp.float32)
    color = jax.random.uniform(k_col, (N, 3), jnp.float32)
    batch = jnp.repeat(jnp.arange(B, dtype=jnp.int32), N // B)   # [N]

    params = init_params(k_par, layer_sizes)

    out = featurenet_forward(points, color, batch, params, B)
    out = jax.block_until_ready(out)

    ref = featurenet_reference(points, color, batch, params, B)
    assert out.shape == (B, layer_sizes[-1])
    # bf16 MXU inputs -> looser tolerance than the f32 reference.
    assert jnp.allclose(out, ref, atol=5e-2, rtol=5e-2), "Pallas kernel mismatch vs reference"

    print("KERNEL_OK")
</pallas_src>

<mosaic_0001>
module attributes {stable_mosaic.version = 11 : i64} {
  func.func @featurenet_kernel(%arg0: i32, %arg1: i32, %arg2: memref<6x128xbf16, #tpu.memory_space<vmem>>, %arg3: memref<1x128xi32, #tpu.memory_space<vmem>>, %arg4: memref<32x6xbf16, #tpu.memory_space<vmem>>, %arg5: memref<32x1xf32, #tpu.memory_space<vmem>>, %arg6: memref<128x32xbf16, #tpu.memory_space<vmem>>, %arg7: memref<128x1xf32, #tpu.memory_space<vmem>>, %arg8: memref<256x128xbf16, #tpu.memory_space<vmem>>, %arg9: memref<1x256x2xf32, #tpu.memory_space<vmem>>) attributes {dimension_semantics = [#tpu.dimension_semantics<parallel>, #tpu.dimension_semantics<arbitrary>], iteration_bounds = array<i64: 2, 1>, scalar_prefetch = 0 : i64, scratch_operands = 0 : i64, tpu.core_type = #tpu.core_type<tc>, window_params = [{transform_indices = @transform_0, window_bounds = array<i64: 6, 128>}, {transform_indices = @transform_1, window_bounds = array<i64: 1, 128>}, {pipeline_mode = #tpu.pipeline_mode<synchronous>, transform_indices = @transform_2, window_bounds = array<i64: 32, 6>}, {pipeline_mode = #tpu.pipeline_mode<synchronous>, transform_indices = @transform_3, window_bounds = array<i64: 32, 1>}, {pipeline_mode = #tpu.pipeline_mode<synchronous>, transform_indices = @transform_4, window_bounds = array<i64: 128, 32>}, {pipeline_mode = #tpu.pipeline_mode<synchronous>, transform_indices = @transform_5, window_bounds = array<i64: 128, 1>}, {pipeline_mode = #tpu.pipeline_mode<synchronous>, transform_indices = @transform_6, window_bounds = array<i64: 256, 128>}, {transform_indices = @transform_7, window_bounds = array<i64: 1, 256, 2>}]} {
    %c0_i32 = arith.constant 0 : i32
    %0 = arith.cmpi eq, %arg1, %c0_i32 : i32
    %1 = arith.extui %0 : i1 to i32
    %c0_i32_0 = arith.constant 0 : i32
    %2 = arith.cmpi ne, %1, %c0_i32_0 : i32
    scf.if %2 {
      %cst_31 = arith.constant 0xFF800000 : f32
      %46 = vector.broadcast %cst_31 : f32 to vector<1x256x2xf32>
      %c0_32 = arith.constant 0 : index
      %c0_33 = arith.constant 0 : index
      %c0_34 = arith.constant 0 : index
      %47 = vector.load %arg9[%c0_32, %c0_33, %c0_34] : memref<1x256x2xf32, #tpu.memory_space<vmem>>, vector<1x256x2xf32>
      tpu.vector_store %arg9[%c0_32, %c0_33, %c0_34], %46 {strides = array<i32>} : memref<1x256x2xf32, #tpu.memory_space<vmem>>, vector<1x256x2xf32>,
    } else {
    }
    %c0 = arith.constant 0 : index
    %c0_1 = arith.constant 0 : index
    %3 = vector.load %arg4[%c0, %c0_1] : memref<32x6xbf16, #tpu.memory_space<vmem>>, vector<32x6xbf16>
    %c0_2 = arith.constant 0 : index
    %c0_3 = arith.constant 0 : index
    %4 = vector.load %arg2[%c0_2, %c0_3] : memref<6x128xbf16, #tpu.memory_space<vmem>>, vector<6x128xbf16>
    %cst = arith.constant dense<0.000000e+00> : vector<32x128xf32>
    %5 = tpu.matmul %3, %4, %cst {dimension_numbers = #tpu.dot_dimension_numbers<[1], [0], [0], [1], [0, 0, 1, 1], [], []>} : vector<32x6xbf16>, vector<6x128xbf16>, vector<32x128xf32> -> vector<32x128xf32>
    %c0_4 = arith.constant 0 : index
    %c0_5 = arith.constant 0 : index
    %6 = vector.load %arg5[%c0_4, %c0_5] : memref<32x1xf32, #tpu.memory_space<vmem>>, vector<32x1xf32>
    %7 = vector.broadcast %6 : vector<32x1xf32> to vector<32x128xf32>
    %8 = arith.addf %5, %7 : vector<32x128xf32>
    %cst_6 = arith.constant 0.000000e+00 : f32
    %9 = vector.broadcast %cst_6 : f32 to vector<32x128xf32>
    %10 = arith.maximumf %8, %9 : vector<32x128xf32>
    %11 = arith.truncf %10 : vector<32x128xf32> to vector<32x128xbf16>
    %c0_7 = arith.constant 0 : index
    %c0_8 = arith.constant 0 : index
    %12 = vector.load %arg6[%c0_7, %c0_8] : memref<128x32xbf16, #tpu.memory_space<vmem>>, vector<128x32xbf16>
    %cst_9 = arith.constant dense<0.000000e+00> : vector<128x128xf32>
    %13 = tpu.matmul %12, %11, %cst_9 {dimension_numbers = #tpu.dot_dimension_numbers<[1], [0], [0], [1], [0, 0, 1, 1], [], []>} : vector<128x32xbf16>, vector<32x128xbf16>, vector<128x128xf32> -> vector<128x128xf32>
    %c0_10 = arith.constant 0 : index
    %c0_11 = arith.constant 0 : index
    %14 = vector.load %arg7[%c0_10, %c0_11] : memref<128x1xf32, #tpu.memory_space<vmem>>, vector<128x1xf32>
    %15 = vector.broadcast %14 : vector<128x1xf32> to vector<128x128xf32>
    %16 = arith.addf %13, %15 : vector<128x128xf32>
    %cst_12 = arith.constant 0.000000e+00 : f32
    %17 = vector.broadcast %cst_12 : f32 to vector<128x128xf32>
    %18 = arith.maximumf %16, %17 : vector<128x128xf32>
    %19 = arith.truncf %18 : vector<128x128xf32> to vector<128x128xbf16>
    %c0_13 = arith.constant 0 : index
    %c0_14 = arith.constant 0 : index
    %20 = vector.load %arg8[%c0_13, %c0_14] : memref<256x128xbf16, #tpu.memory_space<vmem>>, vector<256x128xbf16>
    %cst_15 = arith.constant dense<0.000000e+00> : vector<256x128xf32>
    %21 = tpu.matmul %20, %19, %cst_15 {dimension_numbers = #tpu.dot_dimension_numbers<[1], [0], [0], [1], [0, 0, 1, 1], [], []>} : vector<256x128xbf16>, vector<128x128xbf16>, vector<256x128xf32> -> vector<256x128xf32>
    %c0_16 = arith.constant 0 : index
    %c0_17 = arith.constant 0 : index
    %22 = vector.load %arg3[%c0_16, %c0_17] : memref<1x128xi32, #tpu.memory_space<vmem>>, vector<1x128xi32>
    %c0_i32_18 = arith.constant 0 : i32
    %23 = vector.broadcast %c0_i32_18 : i32 to vector<1x128xi32>
    %24 = arith.cmpi eq, %22, %23 : vector<1x128xi32>
    %cst_19 = arith.constant 0.000000e+00 : f32
    %cst_20 = arith.constant 0xFF800000 : f32
    %25 = vector.broadcast %cst_19 : f32 to vector<1x128xf32>
    %26 = vector.broadcast %cst_20 : f32 to vector<1x128xf32>
    %27 = arith.select %24, %25, %26 : vector<1x128xi1>, vector<1x128xf32>
    %28 = vector.broadcast %27 : vector<1x128xf32> to vector<256x128xf32>
    %29 = arith.addf %21, %28 : vector<256x128xf32>
    %cst_21 = arith.constant dense<0xFF800000> : vector<256xf32>
    %30 = vector.multi_reduction <maximumf>, %29, %cst_21 [1] : vector<256x128xf32> to vector<256xf32>
    %31 = vector.shape_cast %30 : vector<256xf32> to vector<256x1xf32>
    %c1_i32 = arith.constant 1 : i32
    %32 = vector.broadcast %c1_i32 : i32 to vector<1x128xi32>
    %33 = arith.cmpi eq, %22, %32 : vector<1x128xi32>
    %cst_22 = arith.constant 0.000000e+00 : f32
    %cst_23 = arith.constant 0xFF800000 : f32
    %34 = vector.broadcast %cst_22 : f32 to vector<1x128xf32>
    %35 = vector.broadcast %cst_23 : f32 to vector<1x128xf32>
    %36 = arith.select %33, %34, %35 : vector<1x128xi1>, vector<1x128xf32>
    %37 = vector.broadcast %36 : vector<1x128xf32> to vector<256x128xf32>
    %38 = arith.addf %21, %37 : vector<256x128xf32>
    %cst_24 = arith.constant dense<0xFF800000> : vector<256xf32>
    %39 = vector.multi_reduction <maximumf>, %38, %cst_24 [1] : vector<256x128xf32> to vector<256xf32>
    %40 = vector.shape_cast %39 : vector<256xf32> to vector<256x1xf32>
    %41 = tpu.concatenate %31, %40 in 1 : vector<256x1xf32>, vector<256x1xf32> -> vector<256x2xf32>
    %c0_25 = arith.constant 0 : index
    %c0_26 = arith.constant 0 : index
    %c0_27 = arith.constant 0 : index
    %42 = vector.load %arg9[%c0_25, %c0_26, %c0_27] : memref<1x256x2xf32, #tpu.memory_space<vmem>>, vector<1x256x2xf32>
    %43 = vector.shape_cast %41 : vector<256x2xf32> to vector<1x256x2xf32>
    %44 = arith.maximumf %42, %43 : vector<1x256x2xf32>
    %c0_28 = arith.constant 0 : index
    %c0_29 = arith.constant 0 : index
    %c0_30 = arith.constant 0 : index
    %45 = vector.load %arg9[%c0_28, %c0_29, %c0_30] : memref<1x256x2xf32, #tpu.memory_space<vmem>>, vector<1x256x2xf32>
    tpu.vector_store %arg9[%c0_28, %c0_29, %c0_30], %44 {strides = array<i32>} : memref<1x256x2xf32, #tpu.memory_space<vmem>>, vector<1x256x2xf32>,
    return
  }
  func.func @transform_0(%arg0: i32, %arg1: i32) -> (i32, i32) {
    %c1_i32 = arith.constant 1 : i32
    %0 = arith.muli %arg0, %c1_i32 : i32
    %1 = arith.addi %0, %arg1 : i32
    %c0_i32 = arith.constant 0 : i32
    %c0_i32_0 = arith.constant 0 : i32
    return %c0_i32, %1 : i32, i32
  }
  func.func @transform_1(%arg0: i32, %arg1: i32) -> (i32, i32) {
    %c1_i32 = arith.constant 1 : i32
    %0 = arith.muli %arg0, %c1_i32 : i32
    %1 = arith.addi %0, %arg1 : i32
    %c0_i32 = arith.constant 0 : i32
    %c0_i32_0 = arith.constant 0 : i32
    return %c0_i32, %1 : i32, i32
  }
  func.func @transform_2(%arg0: i32, %arg1: i32) -> (i32, i32) {
    %c0_i32 = arith.constant 0 : i32
    %c0_i32_0 = arith.constant 0 : i32
    %c0_i32_1 = arith.constant 0 : i32
    return %c0_i32, %c0_i32_0 : i32, i32
  }
  func.func @transform_3(%arg0: i32, %arg1: i32) -> (i32, i32) {
    %c0_i32 = arith.constant 0 : i32
    %c0_i32_0 = arith.constant 0 : i32
    %c0_i32_1 = arith.constant 0 : i32
    return %c0_i32, %c0_i32_0 : i32, i32
  }
  func.func @transform_4(%arg0: i32, %arg1: i32) -> (i32, i32) {
    %c0_i32 = arith.constant 0 : i32
    %c0_i32_0 = arith.constant 0 : i32
    %c0_i32_1 = arith.constant 0 : i32
    return %c0_i32, %c0_i32_0 : i32, i32
  }
  func.func @transform_5(%arg0: i32, %arg1: i32) -> (i32, i32) {
    %c0_i32 = arith.constant 0 : i32
    %c0_i32_0 = arith.constant 0 : i32
    %c0_i32_1 = arith.constant 0 : i32
    return %c0_i32, %c0_i32_0 : i32, i32
  }
  func.func @transform_6(%arg0: i32, %arg1: i32) -> (i32, i32) {
    %c0_i32 = arith.constant 0 : i32
    %c0_i32_0 = arith.constant 0 : i32
    %c0_i32_1 = arith.constant 0 : i32
    return %c0_i32, %c0_i32_0 : i32, i32
  }
  func.func @transform_7(%arg0: i32, %arg1: i32) -> (i32, i32, i32) {
    %c0_i32 = arith.constant 0 : i32
    %c0_i32_0 = arith.constant 0 : i32
    %c0_i32_1 = arith.constant 0 : i32
    return %arg0, %c0_i32, %c0_i32_0 : i32, i32, i32
  }
}

</mosaic_0001>

<bundles_post_ra>
// kernel: tpu_custom_call.1
= control target key start
LH: loop header
LB: loop body
LE: loop exit
PB: predicated region body
PF: predicated region fallthrough
CT: control target
= control target key end

     0   :  { %s1752_s24 = smov 0   ;;  %s1754_s25 = smov 0   ;;  %s2351_s0 = inlined_call_operand.vmem [shape: bf16[6,256], index: 0, kind: input, shape index: {}]   ;;  %s2352_s1 = inlined_call_operand.vmem [shape: s32[1,256], index: 1, kind: input, shape index: {}]   ;;  %s2353_s2 = inlined_call_operand.vmem [shape: bf16[32,6], index: 2, kind: input, shape index: {}]   ;;  %s2354_s3 = inlined_call_operand.vmem [shape: f32[32,1], index: 3, kind: input, shape index: {}]   ;;  %s2355_s4 = inlined_call_operand.vmem [shape: bf16[128,32], index: 4, kind: input, shape index: {}]   ;;  %s2356_s5 = inlined_call_operand.vmem [shape: f32[128,1], index: 5, kind: input, shape index: {}]   ;;  %s2357_s6 = inlined_call_operand.vmem [shape: bf16[256,128], index: 6, kind: input, shape index: {}]   ;;  %s2358_s7 = inlined_call_operand.vmem [shape: f32[2,256,2], index: 7, kind: output, shape index: {}]  }
   0x1   :  { %s1756_s26 = smov 0  }
   0x2 LB: > { %s29_s27 = sadd.s32 1, %s1704_s25  ;;  %p1461_p0 = scmp.ge.s32.totalorder %s1708_s26, 1  ;;  %s1708_s26 = sphi %s1756_s26, %s17_s26   ;;  %s1704_s25 = sphi %s1754_s25, %s2360_s25   ;;  %s1700_s24 = sphi %s1752_s24, %s2359_s24  }
   0x3   : > { %p31_p1 = scmp.ge.s32.totalorder %s29_s27, 2  ;;  %p264_p2 = scmp.lt.s32.totalorder %s1708_s26, 3 }
   0x5   : > { %s2362_s27 = smov (%p31_p1, %s29_s27), 0  ;;  %p265_p3 = pnand %p1461_p0, %p264_p2 }
   0x6   : > { %p301_p4 = scmp.lt.s32.totalorder (!%p265_p3), %s1700_s24, 1  ;;  %v1660_v0 = vld [vmem:[%s2353_s2] sm:$0xff] (!%p265_p3)   ;;  %vm393_vm0 = vcmask (!%p265_p3), 48128   ;;  %v1710_v2 = vmov (!%p265_p3), 0   ;;  %v361_v3 = vld [vmem:[%s2354_s3 + $0x10] sm:$0xff] (!%p265_p3)  ;;  %vm400_vm1 = vcmask (!%p265_p3), 1042432  }
   0x7   : > { %268 = sbr.rel (%p265_p3) target bundleno = 992 (0x3e0), region = 48  ;;  %1543 = vmatprep.mubr.msk.bf16.mxu1 (!%p265_p3), %vm393_vm0, %v1660_v0  ;;  %v359_v1 = vld [vmem:[%s2354_s3] sm:$0xff] (!%p265_p3)  ;;  %1658 = vset.pattern.permute.xlu0 (!%p265_p3), %v1710_v2  ;;  %v360_v4 = vld [vmem:[%s2354_s3 + $0x8] sm:$0xff] (!%p265_p3)  ;;  %v362_v6 = vld [vmem:[%s2354_s3 + $0x18] sm:$0xff] (!%p265_p3)  ;;  %vm611_vm2 = vcmask (!%p265_p3), 261120   ;;  %vm321_vm5 = vcmask (!%p265_p3), 15360  }
   0x8   : > { %1659 = vset.pattern.permute.xlu1 (!%p265_p3), %v1710_v2  ;;  %365 = vperm.xlu0 (!%p265_p3), %1658, %v359_v1   ;;  %v1661_v8 = vld [vmem:[%s2353_s2 + $0x8] sm:$0xff] (!%p265_p3)   ;;  %v475_v9 = vld [vmem:[%s2356_s5] sm:$0xff] (!%p265_p3)  ;;  %v477_v11 = vld [vmem:[%s2356_s5 + $0x10] sm:$0xff] (!%p265_p3)  ;;  %vm1255_vm6 = vcmask (!%p265_p3), 7168  }
   0x9   : > { %375 = vperm.xlu1 (!%p265_p3), %1659, %v361_v3   ;;  %v476_v10 = vld [vmem:[%s2356_s5 + $0x8] sm:$0xff] (!%p265_p3)  ;;  %v478_v12 = vld [vmem:[%s2356_s5 + $0x18] sm:$0xff] (!%p265_p3)  ;;  %v479_v13 = vld [vmem:[%s2356_s5 + $0x20] sm:$0xff] (!%p265_p3) }
   0xa   : > { %v480_v14 = vld [vmem:[%s2356_s5 + $0x28] sm:$0xff] (!%p265_p3)  ;;  %v481_v15 = vld [vmem:[%s2356_s5 + $0x30] sm:$0xff] (!%p265_p3)  ;;  %v482_v16 = vld [vmem:[%s2356_s5 + $0x38] sm:$0xff] (!%p265_p3) }
   0xb   : > { %v483_v17 = vld [vmem:[%s2356_s5 + $0x40] sm:$0xff] (!%p265_p3)  ;;  %v484_v18 = vld [vmem:[%s2356_s5 + $0x48] sm:$0xff] (!%p265_p3)  ;;  %v485_v19 = vld [vmem:[%s2356_s5 + $0x50] sm:$0xff] (!%p265_p3) }
   0xc   : > { %370 = vperm.xlu0 (!%p265_p3), %1658, %v360_v4   ;;  %v486_v20 = vld [vmem:[%s2356_s5 + $0x58] sm:$0xff] (!%p265_p3)  ;;  %v487_v21 = vld [vmem:[%s2356_s5 + $0x60] sm:$0xff] (!%p265_p3)  ;;  %v488_v22 = vld [vmem:[%s2356_s5 + $0x68] sm:$0xff] (!%p265_p3) }
   0xd   : > { %380 = vperm.xlu1 (!%p265_p3), %1659, %v362_v6   ;;  %v489_v23 = vld [vmem:[%s2356_s5 + $0x70] sm:$0xff] (!%p265_p3)  ;;  %v490_v24 = vld [vmem:[%s2356_s5 + $0x78] sm:$0xff] (!%p265_p3)  ;;  %v1662_v25 = vld [vmem:[%s2355_s4] sm:$0xff] (!%p265_p3)  }
   0xe   : > { %s2364_s24 = smov (!%p301_p4, %s1700_s24), 1  ;;  %v1663_v44 = vld [vmem:[%s2355_s4 + $0x8] sm:$0xff]   ;;  %v1664_v45 = vld [vmem:[%s2355_s4 + $0x10] sm:$0xff]   ;;  %v1665_v46 = vld [vmem:[%s2355_s4 + $0x18] sm:$0xff]  }
   0xf   : > { %s1462_s11 = sshll.u32 %s2364_s24, 2  ;;  %v1666_v47 = vld [vmem:[%s2355_s4 + $0x20] sm:$0xff]   ;;  %v1667_v48 = vld [vmem:[%s2355_s4 + $0x28] sm:$0xff]   ;;  %v1668_v49 = vld [vmem:[%s2355_s4 + $0x30] sm:$0xff]   ;;  %s309_s8 = scalar_lea.vmem %s2352_s1, %s2364_s24 }
  0x10   : > { %s304_s14 = scalar_lea.vmem %s2351_s0, %s1462_s11  ;;  %493 = vperm.xlu0 %1658, %v475_v9   ;;  %v1669_v50 = vld [vmem:[%s2355_s4 + $0x38] sm:$0xff]   ;;  %v1670_v51 = vld [vmem:[%s2357_s6] sm:$0xff]   ;;  %v1671_v52 = vld [vmem:[%s2357_s6 + $0x50] sm:$0xff]   ;;  %s1503_s9 = sshll.u32 %s2364_s24, 8 }
  0x11   : > { %v358_v5 = vld [vmem:[%s304_s14] sm:$0x7]  ;;  %498 = vperm.xlu1 %1659, %v476_v10   ;;  %1583 = vmatprep.mubr.bf16.mxu0 %v1670_v51  ;;  %s1998_s11 = scalar_lea.vmem %s2358_s7, %s1503_s9 }
  0x12   : > { %1631 = vmatprep.subr.msk.bf16.mxu1 %vm400_vm1, %v358_v5  ;;  %v402_v7 = vsel %vm400_vm1, %v358_v5, 0 }
  0x13   : > { %1542 = vmatpush3.bf16.msra.mxu1 %v402_v7 }
  0x14   : > { %503 = vperm.xlu0 %1658, %v477_v11  }
  0x15   : > { %508 = vperm.xlu1 %1659, %v478_v12  }
  0x16   : > { %1544 = vmatmul.mubr.msk.bf16.vlgmr.msra.gmra.mrb[0].mxu1 %vm393_vm0, %v1661_v8 }
  0x17   : > { %1551 = vmatprep.mubr.msk.bf16.mxu1 %vm611_vm2, %v1662_v25 }
  0x18   : > { %513 = vperm.xlu0 %1658, %v479_v13  }
  0x19   : > { %518 = vperm.xlu1 %1659, %v480_v14  }
  0x1c   : > { %523 = vperm.xlu0 %1658, %v481_v15  }
  0x1d   : > { %528 = vperm.xlu1 %1659, %v482_v16  }
  0x20   : > { %533 = vperm.xlu0 %1658, %v483_v17  }
  0x21   : > { %538 = vperm.xlu1 %1659, %v484_v18  }
  0x24   : > { %543 = vperm.xlu0 %1658, %v485_v19  }
  0x25   : > { %548 = vperm.xlu1 %1659, %v486_v20  }
  0x28   : > { %553 = vperm.xlu0 %1658, %v487_v21  }
  0x29   : > { %558 = vperm.xlu1 %1659, %v488_v22  }
  0x2c   : > { %563 = vperm.xlu0 %1658, %v489_v23  }
  0x2d   : > { %568 = vperm.xlu1 %1659, %v490_v24  }
  0x87   : > { %v366_v27 = vpop.permute.xlu0 %365 }
  0x88   : > { %v376_v26 = vpop.permute.xlu1 %375 }
  0x8b   : > { %v371_v34 = vpop.permute.xlu0 %370 }
  0x8c   : > { %v381_v31 = vpop.permute.xlu1 %380 }
  0x8f   : > { %v494_v53 = vpop.permute.xlu0 %493 }
  0x90   : > { %v499_v54 = vpop.permute.xlu1 %498 }
  0x93   : > { %v504_v55 = vpop.permute.xlu0 %503 }
  0x94   : > { %v509_v56 = vpop.permute.xlu1 %508 }
  0x97   : > { %v514_v57 = vpop.permute.xlu0 %513 }
  0x98   : > { %v519_v58 = vpop.permute.xlu1 %518 }
  0x9b   : > { %v524_v59 = vpop.permute.xlu0 %523 }
  0x9c   : > { %v529_v63 = vpop.permute.xlu1 %528 }
  0x9f   : > { %v534_v7 = vpop.permute.xlu0 %533 }
  0xa0   : > { %v539_v11 = vpop.permute.xlu1 %538 }
  0xa3   : > { %v544_v20 = vpop.permute.xlu0 %543 }
  0xa4   : > { %v549_v24 = vpop.permute.xlu1 %548 }
  0xe9   : > { %v1545_v28 = vpop.f32.mrb[0].mxu1 }
  0xea   : > { %v447_v29 = vadd.f32 %v1545_v28, %v376_v26  ;;  %v438_v30 = vpop.f32.mrb[1].mxu1 }
  0xeb   : > { %v439_v32 = vadd.f32 %v438_v30, %v366_v27  ;;  %v1546_v33 = vpop.f32.mrb[2].mxu1 }
  0xec   : > { %v450_v35 = vadd.f32 %v1546_v33, %v381_v31  ;;  %v441_v36 = vpop.f32.mrb[3].mxu1  ;;  %v455_v38 = vmax.f32 %v447_v29, 0.0 }
  0xed   : > { %v442_v37 = vadd.f32 %v441_v36, %v371_v34  ;;  %v453_v40 = vmax.f32 %v439_v32, 0.0  ;;  %v554_v32 = vpop.permute.xlu0 %553 }
  0xee   : > { %v456_v39 = vmax.f32 %v450_v35, 0.0 }
  0xef   : > { %v454_v41 = vmax.f32 %v442_v37, 0.0  ;;  %v559_v37 = vpop.permute.xlu1 %558 }
  0xf0   : > { %v458_v42 = vpack.c.bf16 %v456_v39, %v455_v38 }
  0xf1   : > { %v457_v43 = vpack.c.bf16 %v454_v41, %v453_v40 }
  0xf3   : > { %1547 = vmatprep.subr.bf16.mxu1 %v457_v43 }
  0xf4   : > { %1548 = vmatpush3.bf16.msra.mxu1 %v457_v43 }
  0xf5   : > { %1549 = vmatprep.subr.bf16.mxu1 %v458_v42 }
  0xf8   : > { %1550 = vmatpush3.bf16.msra.mxu1 %v458_v42 }
  0xfb   : > { %1552 = vmatmul.mubr.msk.bf16.vlgmr.msra.gmra.mrb[4].mxu1 %vm611_vm2, %v1663_v44  ;;  %v564_v44 = vpop.permute.xlu0 %563 }
  0xfc   : > { %1555 = vmatprep.mubr.msk.bf16.mxu1 %vm611_vm2, %v1664_v45 }
 0x103   : > { %1556 = vmatmul.mubr.msk.bf16.gmra.mrb[8].mxu1 %vm611_vm2, %v1665_v46 }
 0x104   : > { %1559 = vmatprep.mubr.msk.bf16.mxu1 %vm611_vm2, %v1666_v47 }
 0x10b   : > { %1560 = vmatmul.mubr.msk.bf16.gmra.mrb[12].mxu1 %vm611_vm2, %v1667_v48 }
 0x10c   : > { %1563 = vmatprep.mubr.msk.bf16.mxu1 %vm611_vm2, %v1668_v49  ;;  %v569_v49 = vpop.permute.xlu1 %568 }
 0x113   : > { %1564 = vmatmul.mubr.msk.bf16.gmra.mrb[16].mxu1 %vm611_vm2, %v1669_v50 }
 0x114   : > { %1603 = vmatprep.mubr.bf16.mxu1 %v1671_v52 }
 0x1ce   : > { %v1553_v60 = vpop.f32.mrb[4].mxu1 }
 0x1cf   : > { %v679_v61 = vadd.f32 %v1553_v60, %v504_v55  ;;  %v670_v62 = vpop.f32.mrb[5].mxu1 }
 0x1d0   : > { %v671_v0 = vadd.f32 %v670_v62, %v494_v53  ;;  %v1554_v1 = vpop.f32.mrb[6].mxu1  ;;  %v1673_v62 = vld [vmem:[%s2357_s6 + $0x58] sm:$0xff]  }
 0x1d1   : > { %v682_v2 = vadd.f32 %v1554_v1, %v509_v56  ;;  %v673_v3 = vpop.f32.mrb[7].mxu1  ;;  %v735_v5 = vmax.f32 %v679_v61, 0.0  ;;  %v1672_v61 = vld [vmem:[%s2357_s6 + $0x8] sm:$0xff]   ;;  %v1675_v1 = vld [vmem:[%s2357_s6 + $0x18] sm:$0xff]  }
 0x1d2   : > { %v674_v4 = vadd.f32 %v673_v3, %v499_v54  ;;  %v733_v8 = vmax.f32 %v671_v0, 0.0  ;;  %v1676_v0 = vld [vmem:[%s2357_s6 + $0x60] sm:$0xff]  }
 0x1d3   : > { %v736_v6 = vmax.f32 %v682_v2, 0.0  ;;  %v1677_v2 = vld [vmem:[%s2357_s6 + $0x68] sm:$0xff]   ;;  %v1678_v3 = vld [vmem:[%s2357_s6 + $0x20] sm:$0xff]  }
 0x1d4   : > { %v734_v9 = vmax.f32 %v674_v4, 0.0  ;;  %v1680_v4 = vld [vmem:[%s2357_s6 + $0x70] sm:$0xff]  }
 0x1d5   : > { %v750_v10 = vpack.c.bf16 %v736_v6, %v735_v5  ;;  %v1679_v5 = vld [vmem:[%s2357_s6 + $0x28] sm:$0xff]   ;;  %v1681_v6 = vld [vmem:[%s2357_s6 + $0x78] sm:$0xff]  }
 0x1d6   : > { %v749_v12 = vpack.c.bf16 %v734_v9, %v733_v8  ;;  %v1557_v13 = vpop.f32.mrb[8].mxu1  ;;  %v1683_v8 = vld [vmem:[%s2357_s6 + $0x38] sm:$0xff]   ;;  %v1684_v9 = vld [vmem:[%s2357_s6 + $0x40] sm:$0xff]  }
 0x1d7   : > { %v695_v14 = vadd.f32 %v1557_v13, %v524_v59  ;;  %v686_v15 = vpop.f32.mrb[9].mxu1 }
 0x1d8   : > { %v687_v16 = vadd.f32 %v686_v15, %v514_v57  ;;  %v1558_v17 = vpop.f32.mrb[10].mxu1  ;;  %1567 = vmatprep.subr.bf16.mxu0 %v749_v12  ;;  %1615 = vmatprep.subr.bf16.mxu1 %v749_v12  ;;  %v1711_v15 = vmov -inf  }
 0x1d9   : > { %v698_v18 = vadd.f32 %v1558_v17, %v529_v63  ;;  %v689_v19 = vpop.f32.mrb[11].mxu1  ;;  %1568 = vmatpush3.bf16.msra.mxu0 %v749_v12  ;;  %1623 = vmatpush3.bf16.msra.mxu1 %v749_v12  ;;  %v739_v22 = vmax.f32 %v695_v14, 0.0  ;;  %v1674_v63 = vld [vmem:[%s2357_s6 + $0x10] sm:$0xff]   ;;  %v1046_v12 = vld [vmem:[%s309_s8] sm:$0x1]  ;;  %324 = vst.msk [vmem:[%s1998_s11 + $0x10] sm:$0xff] %vm321_vm5, %v1711_v15 }
 0x1da   : > { %v690_v21 = vadd.f32 %v689_v19, %v519_v58  ;;  %1569 = vmatprep.subr.bf16.mxu0 %v750_v10  ;;  %1616 = vmatprep.subr.bf16.mxu1 %v750_v10  ;;  %v737_v25 = vmax.f32 %v687_v16, 0.0  ;;  %vm1047_vm3 = vcmp.eq.s32.totalorder %v1046_v12, 0  ;;  %vm1151_vm4 = vcmp.eq.s32.totalorder %v1046_v12, 1  ;;  %322 = vst.msk [vmem:[%s1998_s11] sm:$0xff] %vm321_vm5, %v1711_v15  ;;  %323 = vst.msk [vmem:[%s1998_s11 + $0x8] sm:$0xff] %vm321_vm5, %v1711_v15 }
 0x1db   : > { %v740_v23 = vmax.f32 %v698_v18, 0.0  ;;  %v1048_v16 = vsel %vm1047_vm3, 0.0, %v1711_v15  ;;  %v1152_v17 = vsel %vm1151_vm4, 0.0, %v1711_v15  ;;  %325 = vst.msk [vmem:[%s1998_s11 + $0x18] sm:$0xff] %vm321_vm5, %v1711_v15  ;;  %326 = vst.msk [vmem:[%s1998_s11 + $0x20] sm:$0xff] %vm321_vm5, %v1711_v15 }
 0x1dc   : > { %v738_v26 = vmax.f32 %v690_v21, 0.0  ;;  %327 = vst.msk [vmem:[%s1998_s11 + $0x28] sm:$0xff] %vm321_vm5, %v1711_v15  ;;  %328 = vst.msk [vmem:[%s1998_s11 + $0x30] sm:$0xff] %vm321_vm5, %v1711_v15 }
 0x1dd   : > { %v752_v27 = vpack.c.bf16 %v740_v23, %v739_v22  ;;  %1570 = vmatpush3.bf16.msra.mxu0 %v750_v10  ;;  %1624 = vmatpush3.bf16.msra.mxu1 %v750_v10  ;;  %v1685_v10 = vld [vmem:[%s2357_s6 + $0x48] sm:$0xff]   ;;  %329 = vst.msk [vmem:[%s1998_s11 + $0x38] sm:$0xff] %vm321_vm5, %v1711_v15  ;;  %330 = vst.msk [vmem:[%s1998_s11 + $0x40] sm:$0xff] %vm321_vm5, %v1711_v15 }
 0x1de   : > { %v751_v28 = vpack.c.bf16 %v738_v26, %v737_v25  ;;  %v1561_v29 = vpop.f32.mrb[12].mxu1  ;;  %331 = vst.msk [vmem:[%s1998_s11 + $0x48] sm:$0xff] %vm321_vm5, %v1711_v15  ;;  %332 = vst.msk [vmem:[%s1998_s11 + $0x50] sm:$0xff] %vm321_vm5, %v1711_v15 }
 0x1df   : > { %v711_v30 = vadd.f32 %v1561_v29, %v544_v20  ;;  %v702_v31 = vpop.f32.mrb[13].mxu1  ;;  %333 = vst.msk [vmem:[%s1998_s11 + $0x58] sm:$0xff] %vm321_vm5, %v1711_v15  ;;  %334 = vst.msk [vmem:[%s1998_s11 + $0x60] sm:$0xff] %vm321_vm5, %v1711_v15 }
 0x1e0   : > { %v703_v33 = vadd.f32 %v702_v31, %v534_v7  ;;  %v1562_v34 = vpop.f32.mrb[14].mxu1  ;;  %1571 = vmatprep.subr.bf16.mxu0 %v751_v28  ;;  %1617 = vmatprep.subr.bf16.mxu1 %v751_v28  ;;  %v1682_v7 = vld [vmem:[%s2357_s6 + $0x30] sm:$0xff]   ;;  %335 = vst.msk [vmem:[%s1998_s11 + $0x68] sm:$0xff] %vm321_vm5, %v1711_v15  ;;  %336 = vst.msk [vmem:[%s1998_s11 + $0x70] sm:$0xff] %vm321_vm5, %v1711_v15 }
 0x1e1   : > { %v714_v35 = vadd.f32 %v1562_v34, %v549_v24  ;;  %v705_v36 = vpop.f32.mrb[15].mxu1  ;;  %1572 = vmatpush3.bf16.msra.mxu0 %v751_v28  ;;  %1625 = vmatpush3.bf16.msra.mxu1 %v751_v28  ;;  %v743_v39 = vmax.f32 %v711_v30, 0.0  ;;  %337 = vst.msk [vmem:[%s1998_s11 + $0x78] sm:$0xff] %vm321_vm5, %v1711_v15  ;;  %338 = vst.msk [vmem:[%s1998_s11 + $0x80] sm:$0xff] %vm321_vm5, %v1711_v15 }
 0x1e2   : > { %v706_v38 = vadd.f32 %v705_v36, %v539_v11  ;;  %1573 = vmatprep.subr.bf16.mxu0 %v752_v27  ;;  %1618 = vmatprep.subr.bf16.mxu1 %v752_v27  ;;  %v741_v41 = vmax.f32 %v703_v33, 0.0  ;;  %v1050_v11 = vlaneseq  ;;  %339 = vst.msk [vmem:[%s1998_s11 + $0x88] sm:$0xff] %vm321_vm5, %v1711_v15  ;;  %340 = vst.msk [vmem:[%s1998_s11 + $0x90] sm:$0xff] %vm321_vm5, %v1711_v15 }
 0x1e3   : > { %v744_v40 = vmax.f32 %v714_v35, 0.0  ;;  %341 = vst.msk [vmem:[%s1998_s11 + $0x98] sm:$0xff] %vm321_vm5, %v1711_v15  ;;  %342 = vst.msk [vmem:[%s1998_s11 + $0xa0] sm:$0xff] %vm321_vm5, %v1711_v15 }
 0x1e4   : > { %v742_v42 = vmax.f32 %v706_v38, 0.0  ;;  %v1051_v13 = vshrl.u32 %v1050_v11, 7  ;;  %343 = vst.msk [vmem:[%s1998_s11 + $0xa8] sm:$0xff] %vm321_vm5, %v1711_v15  ;;  %344 = vst.msk [vmem:[%s1998_s11 + $0xb0] sm:$0xff] %vm321_vm5, %v1711_v15 }
 0x1e5   : > { %v754_v43 = vpack.c.bf16 %v744_v40, %v743_v39  ;;  %1574 = vmatpush3.bf16.msra.mxu0 %v752_v27  ;;  %1626 = vmatpush3.bf16.msra.mxu1 %v752_v27  ;;  %345 = vst.msk [vmem:[%s1998_s11 + $0xb8] sm:$0xff] %vm321_vm5, %v1711_v15  ;;  %346 = vst.msk [vmem:[%s1998_s11 + $0xc0] sm:$0xff] %vm321_vm5, %v1711_v15 }
 0x1e6   : > { %v753_v45 = vpack.c.bf16 %v742_v42, %v741_v41  ;;  %v1565_v46 = vpop.f32.mrb[16].mxu1  ;;  %v1052_v14 = vsub.s32 0, %v1051_v13  ;;  %347 = vst.msk [vmem:[%s1998_s11 + $0xc8] sm:$0xff] %vm321_vm5, %v1711_v15  ;;  %348 = vst.msk [vmem:[%s1998_s11 + $0xd0] sm:$0xff] %vm321_vm5, %v1711_v15 }
 0x1e7   : > { %v727_v47 = vadd.f32 %v1565_v46, %v564_v44  ;;  %v718_v48 = vpop.f32.mrb[17].mxu1  ;;  %349 = vst.msk [vmem:[%s1998_s11 + $0xd8] sm:$0xff] %vm321_vm5, %v1711_v15  ;;  %350 = vst.msk [vmem:[%s1998_s11 + $0xe0] sm:$0xff] %vm321_vm5, %v1711_v15 }
 0x1e8   : > { %v719_v50 = vadd.f32 %v718_v48, %v554_v32  ;;  %v1566_v51 = vpop.f32.mrb[18].mxu1  ;;  %1575 = vmatprep.subr.bf16.mxu0 %v753_v45  ;;  %1619 = vmatprep.subr.bf16.mxu1 %v753_v45  ;;  %v1930_v18 = vrot.slane %v1048_v16, %v1052_v14  ;;  %v1932_v19 = vrot.slane %v1152_v17, %v1052_v14 }
 0x1e9   : > { %v730_v52 = vadd.f32 %v1566_v51, %v569_v49  ;;  %v721_v53 = vpop.f32.mrb[19].mxu1  ;;  %1576 = vmatpush3.bf16.msra.mxu0 %v753_v45  ;;  %1627 = vmatpush3.bf16.msra.mxu1 %v753_v45  ;;  %v747_v55 = vmax.f32 %v727_v47, 0.0  ;;  %351 = vst.msk [vmem:[%s1998_s11 + $0xe8] sm:$0xff] %vm321_vm5, %v1711_v15  ;;  %352 = vst.msk [vmem:[%s1998_s11 + $0xf0] sm:$0xff] %vm321_vm5, %v1711_v15 }
 0x1ea   : > { %v722_v54 = vadd.f32 %v721_v53, %v559_v37  ;;  %1577 = vmatprep.subr.bf16.mxu0 %v754_v43  ;;  %1620 = vmatprep.subr.bf16.mxu1 %v754_v43  ;;  %v745_v57 = vmax.f32 %v719_v50, 0.0  ;;  %353 = vst.msk [vmem:[%s1998_s11 + $0xf8] sm:$0xff] %vm321_vm5, %v1711_v15 }
 0x1eb   : > { %v748_v56 = vmax.f32 %v730_v52, 0.0 }
 0x1ec   : > { %v746_v58 = vmax.f32 %v722_v54, 0.0 }
 0x1ed   : > { %v756_v59 = vpack.c.bf16 %v748_v56, %v747_v55  ;;  %1578 = vmatpush3.bf16.msra.mxu0 %v754_v43  ;;  %1628 = vmatpush3.bf16.msra.mxu1 %v754_v43 }
 0x1ee   : > { %v755_v60 = vpack.c.bf16 %v746_v58, %v745_v57 }
 0x1f0   : > { %1579 = vmatprep.subr.bf16.mxu0 %v755_v60  ;;  %1621 = vmatprep.subr.bf16.mxu1 %v755_v60 }
 0x1f1   : > { %1580 = vmatpush3.bf16.msra.mxu0 %v755_v60  ;;  %1629 = vmatpush3.bf16.msra.mxu1 %v755_v60 }
 0x1f2   : > { %1581 = vmatprep.subr.bf16.mxu0 %v756_v59  ;;  %1622 = vmatprep.subr.bf16.mxu1 %v756_v59 }
 0x1f5   : > { %1582 = vmatpush3.bf16.msra.mxu0 %v756_v59  ;;  %1630 = vmatpush3.bf16.msra.mxu1 %v756_v59 }
 0x1f8   : > { %1584 = vmatmul.mubr.bf16.vlgmr.msra.gmra.mrb[0].mxu0 %v1672_v61  ;;  %1604 = vmatmul.mubr.bf16.vlgmr.msra.gmra.mrb[20].mxu1 %v1673_v62 }
 0x1f9   : > { %1587 = vmatprep.mubr.bf16.mxu0 %v1674_v63  ;;  %1607 = vmatprep.mubr.bf16.mxu1 %v1676_v0 }
 0x200   : > { %1588 = vmatmul.mubr.bf16.gmra.mrb[4].mxu0 %v1675_v1  ;;  %1608 = vmatmul.mubr.bf16.gmra.mrb[24].mxu1 %v1677_v2 }
 0x201   : > { %1591 = vmatprep.mubr.bf16.mxu0 %v1678_v3  ;;  %1611 = vmatprep.mubr.bf16.mxu1 %v1680_v4 }
 0x208   : > { %1592 = vmatmul.mubr.bf16.gmra.mrb[8].mxu0 %v1679_v5  ;;  %1612 = vmatmul.mubr.bf16.gmra.mrb[28].mxu1 %v1681_v6 }
 0x209   : > { %1595 = vmatprep.mubr.bf16.mxu0 %v1682_v7 }
 0x210   : > { %1596 = vmatmul.mubr.bf16.gmra.mrb[12].mxu0 %v1683_v8 }
 0x211   : > { %1599 = vmatprep.mubr.bf16.mxu0 %v1684_v9 }
 0x218   : > { %1600 = vmatmul.mubr.bf16.gmra.mrb[16].mxu0 %v1685_v10 }
 0x2cb   : > { %v1585_v20 = vpop.f32.mrb[0].mxu0  ;;  %v1605_v21 = vpop.f32.mrb[20].mxu1 }
 0x2cc   : > { %v919_v22 = vpop.f32.mrb[1].mxu0  ;;  %v1077_v23 = vadd.f32 %v1605_v21, %v1930_v18  ;;  %v1057_v24 = vadd.f32 %v1585_v20, %v1930_v18  ;;  %v999_v25 = vpop.f32.mrb[21].mxu1  ;;  %v1161_v26 = vadd.f32 %v1585_v20, %v1932_v19  ;;  %v1181_v27 = vadd.f32 %v1605_v21, %v1932_v19 }
 0x2cd   : > { %v1586_v28 = vpop.f32.mrb[2].mxu0  ;;  %v1055_v29 = vadd.f32 %v1930_v18, %v919_v22  ;;  %v1606_v30 = vpop.f32.mrb[22].mxu1  ;;  %v1940_v31 = vadd.f32 %v1930_v18, %v999_v25  ;;  %v1943_v32 = vadd.f32 %v1932_v19, %v919_v22  ;;  %v1946_v33 = vadd.f32 %v1932_v19, %v999_v25 }
 0x2ce   : > { %1131 = vmax.xlane.f32.xlu1 %v1077_v23  ;;  %1091 = vmax.xlane.f32.xlu0 %v1057_v24  ;;  %v922_v34 = vpop.f32.mrb[3].mxu0  ;;  %v1002_v35 = vpop.f32.mrb[23].mxu1  ;;  %v1058_v36 = vadd.f32 %v1586_v28, %v1930_v18  ;;  %v1950_v37 = vadd.f32 %v1606_v30, %v1930_v18  ;;  %v1953_v38 = vadd.f32 %v1586_v28, %v1932_v19 }
 0x2cf   : > { %v1956_v39 = vadd.f32 %v1606_v30, %v1932_v19  ;;  %v1959_v40 = vadd.f32 %v1930_v18, %v1002_v35  ;;  %v1962_v41 = vadd.f32 %v1930_v18, %v922_v34  ;;  %v1965_v42 = vadd.f32 %v1932_v19, %v922_v34 }
 0x2d0   : > { %v1968_v43 = vadd.f32 %v1932_v19, %v1002_v35 }
 0x2d2   : > { %1195 = vmax.xlane.f32.xlu1 %v1161_v26  ;;  %1087 = vmax.xlane.f32.xlu0 %v1055_v29 }
 0x2d3   : > { %v1589_v44 = vpop.f32.mrb[4].mxu0  ;;  %v1609_v45 = vpop.f32.mrb[24].mxu1 }
 0x2d4   : > { %v1972_v46 = vadd.f32 %v1589_v44, %v1930_v18  ;;  %v935_v47 = vpop.f32.mrb[5].mxu0  ;;  %v1975_v48 = vadd.f32 %v1609_v45, %v1930_v18  ;;  %v1015_v49 = vpop.f32.mrb[25].mxu1  ;;  %v1978_v50 = vadd.f32 %v1589_v44, %v1932_v19  ;;  %v1981_v51 = vadd.f32 %v1609_v45, %v1932_v19 }
 0x2d5   : > { %v1590_v52 = vpop.f32.mrb[6].mxu0  ;;  %v1610_v53 = vpop.f32.mrb[26].mxu1  ;;  %v1984_v54 = vadd.f32 %v1930_v18, %v935_v47  ;;  %v1987_v55 = vadd.f32 %v1930_v18, %v1015_v49  ;;  %v1990_v56 = vadd.f32 %v1932_v19, %v935_v47  ;;  %v1993_v57 = vadd.f32 %v1932_v19, %v1015_v49 }
 0x2d6   : > { %1235 = vmax.xlane.f32.xlu1 %v1181_v27  ;;  %1093 = vmax.xlane.f32.xlu0 %v1058_v36  ;;  %v938_v58 = vpop.f32.mrb[7].mxu0  ;;  %v1018_v59 = vpop.f32.mrb[27].mxu1  ;;  %v2001_v60 = vadd.f32 %v1590_v52, %v1930_v18  ;;  %v2004_v61 = vadd.f32 %v1610_v53, %v1930_v18  ;;  %v2007_v62 = vadd.f32 %v1590_v52, %v1932_v19 }
 0x2d7   : > { %v2010_v63 = vadd.f32 %v1610_v53, %v1932_v19  ;;  %v2013_v0 = vadd.f32 %v1930_v18, %v938_v58  ;;  %v2016_v1 = vadd.f32 %v1930_v18, %v1018_v59  ;;  %v2019_v2 = vadd.f32 %v1932_v19, %v938_v58 }
 0x2d8   : > { %v2022_v3 = vadd.f32 %v1932_v19, %v1018_v59 }
 0x2da   : > { %1127 = vmax.xlane.f32.xlu1 %v1940_v31  ;;  %1133 = vmax.xlane.f32.xlu0 %v1950_v37 }
 0x2db   : > { %v1593_v4 = vpop.f32.mrb[8].mxu0  ;;  %v1613_v5 = vpop.f32.mrb[28].mxu1 }
 0x2dc   : > { %v2123_v6 = vadd.f32 %v1593_v4, %v1930_v18  ;;  %v951_v7 = vpop.f32.mrb[9].mxu0  ;;  %v2126_v8 = vadd.f32 %v1613_v5, %v1930_v18  ;;  %v1031_v9 = vpop.f32.mrb[29].mxu1  ;;  %v2129_v10 = vadd.f32 %v1593_v4, %v1932_v19  ;;  %v2132_v11 = vadd.f32 %v1613_v5, %v1932_v19 }
 0x2dd   : > { %v1594_v12 = vpop.f32.mrb[10].mxu0  ;;  %v1614_v13 = vpop.f32.mrb[30].mxu1  ;;  %v2135_v14 = vadd.f32 %v1930_v18, %v951_v7  ;;  %v2138_v15 = vadd.f32 %v1930_v18, %v1031_v9  ;;  %v2141_v16 = vadd.f32 %v1932_v19, %v951_v7  ;;  %v2144_v17 = vadd.f32 %v1932_v19, %v1031_v9 }
 0x2de   : > { %1191 = vmax.xlane.f32.xlu1 %v1943_v32  ;;  %1197 = vmax.xlane.f32.xlu0 %v1953_v38  ;;  %v954_v20 = vpop.f32.mrb[11].mxu0  ;;  %v1034_v21 = vpop.f32.mrb[31].mxu1  ;;  %v1066_v22 = vadd.f32 %v1594_v12, %v1930_v18  ;;  %v1086_v23 = vadd.f32 %v1614_v13, %v1930_v18  ;;  %v1170_v24 = vadd.f32 %v1594_v12, %v1932_v19 }
 0x2df   : > { %v1084_v25 = vadd.f32 %v1930_v18, %v1034_v21  ;;  %v2153_v26 = vadd.f32 %v1932_v19, %v1034_v21  ;;  %v1064_v27 = vadd.f32 %v1930_v18, %v954_v20  ;;  %v1168_v28 = vadd.f32 %v1932_v19, %v954_v20 }
 0x2e0   : > { %v2158_v29 = vadd.f32 %v1614_v13, %v1932_v19 }
 0x2e2   : > { %1231 = vmax.xlane.f32.xlu1 %v1946_v33  ;;  %1237 = vmax.xlane.f32.xlu0 %v1956_v39 }
 0x2e3   : > { %v1597_v30 = vpop.f32.mrb[12].mxu0 }
 0x2e4   : > { %v1069_v31 = vadd.f32 %v1597_v30, %v1930_v18  ;;  %v967_v32 = vpop.f32.mrb[13].mxu0  ;;  %v1173_v34 = vadd.f32 %v1597_v30, %v1932_v19 }
 0x2e5   : > { %v1598_v35 = vpop.f32.mrb[14].mxu0  ;;  %v1067_v36 = vadd.f32 %v1930_v18, %v967_v32  ;;  %v1171_v37 = vadd.f32 %v1932_v19, %v967_v32  ;;  %v1294_v32 = vld [vmem:[%s1998_s11 + $0x30] sm:$0xff] }
 0x2e6   : > { %1129 = vmax.xlane.f32.xlu0 %v1959_v40  ;;  %1089 = vmax.xlane.f32.xlu1 %v1962_v41  ;;  %v970_v38 = vpop.f32.mrb[15].mxu0  ;;  %v1070_v33 = vadd.f32 %v1598_v35, %v1930_v18  ;;  %v1174_v39 = vadd.f32 %v1598_v35, %v1932_v19 }
 0x2e7   : > { %v1068_v44 = vadd.f32 %v1930_v18, %v970_v38  ;;  %v1172_v45 = vadd.f32 %v1932_v19, %v970_v38  ;;  %v1314_v38 = vld [vmem:[%s1998_s11 + $0xd0] sm:$0xff] }
 0x2ea   : > { %1193 = vmax.xlane.f32.xlu0 %v1965_v42  ;;  %1099 = vmax.xlane.f32.xlu1 %v1972_v46 }
 0x2eb   : > { %v1601_v47 = vpop.f32.mrb[16].mxu0 }
 0x2ec   : > { %v1073_v49 = vadd.f32 %v1601_v47, %v1930_v18  ;;  %v983_v52 = vpop.f32.mrb[17].mxu0  ;;  %v1177_v40 = vadd.f32 %v1601_v47, %v1932_v19  ;;  %v1295_v47 = vld [vmem:[%s1998_s11 + $0x38] sm:$0xff] }
 0x2ed   : > { %v1602_v41 = vpop.f32.mrb[18].mxu0  ;;  %v1071_v53 = vadd.f32 %v1930_v18, %v983_v52  ;;  %v1175_v58 = vadd.f32 %v1932_v19, %v983_v52 }
 0x2ee   : > { %1233 = vmax.xlane.f32.xlu0 %v1968_v43  ;;  %1139 = vmax.xlane.f32.xlu1 %v1975_v48  ;;  %v986_v59 = vpop.f32.mrb[19].mxu0  ;;  %v1074_v42 = vadd.f32 %v1602_v41, %v1930_v18  ;;  %v1178_v46 = vadd.f32 %v1602_v41, %v1932_v19  ;;  %v1290_v43 = vld [vmem:[%s1998_s11 + $0x10] sm:$0xff] }
 0x2ef   : > { %v1072_v4 = vadd.f32 %v1930_v18, %v986_v59  ;;  %v1176_v5 = vadd.f32 %v1932_v19, %v986_v59 }
 0x2f2   : > { %1203 = vmax.xlane.f32.xlu1 %v1978_v50  ;;  %1101 = vmax.xlane.f32.xlu0 %v2001_v60 }
 0x2f6   : > { %1243 = vmax.xlane.f32.xlu1 %v1981_v51  ;;  %1141 = vmax.xlane.f32.xlu0 %v2004_v61 }
 0x2fa   : > { %1095 = vmax.xlane.f32.xlu1 %v1984_v54  ;;  %1205 = vmax.xlane.f32.xlu0 %v2007_v62 }
 0x2fe   : > { %1135 = vmax.xlane.f32.xlu1 %v1987_v55  ;;  %1245 = vmax.xlane.f32.xlu0 %v2010_v63  ;;  %v1310_v55 = vld [vmem:[%s1998_s11 + $0xb0] sm:$0xff] }
 0x302   : > { %1199 = vmax.xlane.f32.xlu1 %v1990_v56  ;;  %1097 = vmax.xlane.f32.xlu0 %v2013_v0  ;;  %v1288_v0 = vld [vmem:[%s1998_s11] sm:$0xff] }
 0x306   : > { %1239 = vmax.xlane.f32.xlu1 %v1993_v57  ;;  %1137 = vmax.xlane.f32.xlu0 %v2016_v1  ;;  %v1291_v1 = vld [vmem:[%s1998_s11 + $0x18] sm:$0xff] }
 0x30a   : > { %1201 = vmax.xlane.f32.xlu0 %v2019_v2  ;;  %1107 = vmax.xlane.f32.xlu1 %v2123_v6 }
 0x30e   : > { %1241 = vmax.xlane.f32.xlu0 %v2022_v3  ;;  %1147 = vmax.xlane.f32.xlu1 %v2126_v8 }
 0x312   : > { %1211 = vmax.xlane.f32.xlu1 %v2129_v10  ;;  %1109 = vmax.xlane.f32.xlu0 %v1066_v22  ;;  %v1308_v10 = vld [vmem:[%s1998_s11 + $0xa0] sm:$0xff]  ;;  %v1289_v22 = vld [vmem:[%s1998_s11 + $0x8] sm:$0xff] }
 0x316   : > { %1103 = vmax.xlane.f32.xlu1 %v2135_v14  ;;  %1149 = vmax.xlane.f32.xlu0 %v1086_v23 }
 0x31a   : > { %1143 = vmax.xlane.f32.xlu1 %v2138_v15  ;;  %1213 = vmax.xlane.f32.xlu0 %v1170_v24 }
 0x31e   : > { %1207 = vmax.xlane.f32.xlu1 %v2141_v16  ;;  %1105 = vmax.xlane.f32.xlu0 %v1064_v27  ;;  %v1309_v27 = vld [vmem:[%s1998_s11 + $0xa8] sm:$0xff] }
 0x322   : > { %1247 = vmax.xlane.f32.xlu1 %v2144_v17  ;;  %1145 = vmax.xlane.f32.xlu0 %v1084_v25 }
 0x326   : > { %1209 = vmax.xlane.f32.xlu0 %v1168_v28  ;;  %1115 = vmax.xlane.f32.xlu1 %v1069_v31 }
 0x32a   : > { %1249 = vmax.xlane.f32.xlu0 %v2153_v26  ;;  %1219 = vmax.xlane.f32.xlu1 %v1173_v34 }
 0x32e   : > { %1111 = vmax.xlane.f32.xlu1 %v1067_v36  ;;  %1117 = vmax.xlane.f32.xlu0 %v1070_v33 }
 0x332   : > { %1215 = vmax.xlane.f32.xlu1 %v1171_v37  ;;  %1221 = vmax.xlane.f32.xlu0 %v1174_v39 }
 0x336   : > { %1113 = vmax.xlane.f32.xlu0 %v1068_v44  ;;  %1123 = vmax.xlane.f32.xlu1 %v1073_v49 }
 0x33a   : > { %1217 = vmax.xlane.f32.xlu0 %v1172_v45  ;;  %1227 = vmax.xlane.f32.xlu1 %v1177_v40 }
 0x33e   : > { %1119 = vmax.xlane.f32.xlu1 %v1071_v53  ;;  %1125 = vmax.xlane.f32.xlu0 %v1074_v42  ;;  %v1315_v53 = vld [vmem:[%s1998_s11 + $0xd8] sm:$0xff] }
 0x342   : > { %1223 = vmax.xlane.f32.xlu1 %v1175_v58  ;;  %1229 = vmax.xlane.f32.xlu0 %v1178_v46 }
 0x346   : > { %1251 = vmax.xlane.f32.xlu1 %v2132_v11  ;;  %1121 = vmax.xlane.f32.xlu0 %v1072_v4  ;;  %v1311_v11 = vld [vmem:[%s1998_s11 + $0xb8] sm:$0xff]  ;;  %v1292_v4 = vld [vmem:[%s1998_s11 + $0x20] sm:$0xff] }
 0x34a   : > { %1225 = vmax.xlane.f32.xlu0 %v1176_v5 }
 0x34e   : > { %1253 = vmax.xlane.f32.xlu0 %v2158_v29 }
 0x35b   : > { %v1132_v18 = vpop.xlane.xlu1 %1131  ;;  %v1092_v19 = vpop.xlane.xlu0 %1091 }
 0x35f   : > { %v1196_v48 = vpop.xlane.xlu1 %1195  ;;  %v1088_v50 = vpop.xlane.xlu0 %1087 }
 0x360   : > { %v1258_v51 = vsel %vm1255_vm6, %v1092_v19, %v1196_v48  ;;  %v1312_v48 = vld [vmem:[%s1998_s11 + $0xc0] sm:$0xff] }
 0x361   : > { %v1322_v54 = vmax.f32 %v1290_v43, %v1258_v51 }
 0x363   : > { %1355 = vst.msk [vmem:[%s1998_s11 + $0x10] sm:$0xff] %vm321_vm5, %v1322_v54  ;;  %v1236_v56 = vpop.xlane.xlu1 %1235  ;;  %v1094_v57 = vpop.xlane.xlu0 %1093 }
 0x364   : > { %v1278_v60 = vsel %vm1255_vm6, %v1132_v18, %v1236_v56  ;;  %v1293_v56 = vld [vmem:[%s1998_s11 + $0x28] sm:$0xff] }
 0x365   : > { %v1342_v61 = vmax.f32 %v1310_v55, %v1278_v60 }
 0x367   : > { %1375 = vst.msk [vmem:[%s1998_s11 + $0xb0] sm:$0xff] %vm321_vm5, %v1342_v61  ;;  %v1128_v62 = vpop.xlane.xlu1 %1127  ;;  %v1134_v63 = vpop.xlane.xlu0 %1133 }
 0x36b   : > { %v1192_v2 = vpop.xlane.xlu1 %1191  ;;  %v1198_v3 = vpop.xlane.xlu0 %1197 }
 0x36c   : > { %v1256_v6 = vsel %vm1255_vm6, %v1088_v50, %v1192_v2  ;;  %v1259_v7 = vsel %vm1255_vm6, %v1094_v57, %v1198_v3 }
 0x36d   : > { %v1320_v8 = vmax.f32 %v1288_v0, %v1256_v6  ;;  %v1323_v9 = vmax.f32 %v1291_v1, %v1259_v7  ;;  %v1298_v6 = vld [vmem:[%s1998_s11 + $0x50] sm:$0xff] }
 0x36f   : > { %1353 = vst.msk [vmem:[%s1998_s11] sm:$0xff] %vm321_vm5, %v1320_v8  ;;  %1356 = vst.msk [vmem:[%s1998_s11 + $0x18] sm:$0xff] %vm321_vm5, %v1323_v9  ;;  %v1232_v12 = vpop.xlane.xlu1 %1231  ;;  %v1238_v13 = vpop.xlane.xlu0 %1237 }
 0x370   : > { %v1276_v14 = vsel %vm1255_vm6, %v1128_v62, %v1232_v12  ;;  %v1279_v15 = vsel %vm1255_vm6, %v1134_v63, %v1238_v13  ;;  %v1313_v63 = vld [vmem:[%s1998_s11 + $0xc8] sm:$0xff]  ;;  %v1299_v13 = vld [vmem:[%s1998_s11 + $0x58] sm:$0xff] }
 0x371   : > { %v1340_v16 = vmax.f32 %v1308_v10, %v1276_v14  ;;  %v1343_v17 = vmax.f32 %v1311_v11, %v1279_v15 }
 0x373   : > { %1373 = vst.msk [vmem:[%s1998_s11 + $0xa0] sm:$0xff] %vm321_vm5, %v1340_v16  ;;  %1376 = vst.msk [vmem:[%s1998_s11 + $0xb8] sm:$0xff] %vm321_vm5, %v1343_v17  ;;  %v1130_v20 = vpop.xlane.xlu0 %1129  ;;  %v1090_v21 = vpop.xlane.xlu1 %1089 }
 0x377   : > { %v1194_v23 = vpop.xlane.xlu0 %1193  ;;  %v1100_v24 = vpop.xlane.xlu1 %1099 }
 0x378   : > { %v1257_v25 = vsel %vm1255_vm6, %v1090_v21, %v1194_v23 }
 0x379   : > { %v1321_v26 = vmax.f32 %v1289_v22, %v1257_v25  ;;  %v1316_v25 = vld [vmem:[%s1998_s11 + $0xe0] sm:$0xff] }
 0x37b   : > { %1354 = vst.msk [vmem:[%s1998_s11 + $0x8] sm:$0xff] %vm321_vm5, %v1321_v26  ;;  %v1234_v28 = vpop.xlane.xlu0 %1233  ;;  %v1140_v29 = vpop.xlane.xlu1 %1139 }
 0x37c   : > { %v1277_v30 = vsel %vm1255_vm6, %v1130_v20, %v1234_v28  ;;  %v1296_v20 = vld [vmem:[%s1998_s11 + $0x40] sm:$0xff] }
 0x37d   : > { %v1341_v31 = vmax.f32 %v1309_v27, %v1277_v30  ;;  %v1297_v30 = vld [vmem:[%s1998_s11 + $0x48] sm:$0xff] }
 0x37f   : > { %1374 = vst.msk [vmem:[%s1998_s11 + $0xa8] sm:$0xff] %vm321_vm5, %v1341_v31  ;;  %v1204_v34 = vpop.xlane.xlu1 %1203  ;;  %v1102_v35 = vpop.xlane.xlu0 %1101 }
 0x380   : > { %v1262_v36 = vsel %vm1255_vm6, %v1100_v24, %v1204_v34 }
 0x381   : > { %v1326_v37 = vmax.f32 %v1294_v32, %v1262_v36  ;;  %v1317_v36 = vld [vmem:[%s1998_s11 + $0xe8] sm:$0xff] }
 0x383   : > { %1359 = vst.msk [vmem:[%s1998_s11 + $0x30] sm:$0xff] %vm321_vm5, %v1326_v37  ;;  %v1244_v33 = vpop.xlane.xlu1 %1243  ;;  %v1142_v39 = vpop.xlane.xlu0 %1141  ;;  %v1302_v37 = vld [vmem:[%s1998_s11 + $0x70] sm:$0xff] }
 0x384   : > { %v1282_v44 = vsel %vm1255_vm6, %v1140_v29, %v1244_v33 }
 0x385   : > { %v1346_v45 = vmax.f32 %v1314_v38, %v1282_v44 }
 0x387   : > { %1379 = vst.msk [vmem:[%s1998_s11 + $0xd0] sm:$0xff] %vm321_vm5, %v1346_v45  ;;  %v1096_v49 = vpop.xlane.xlu1 %1095  ;;  %v1206_v52 = vpop.xlane.xlu0 %1205 }
 0x388   : > { %v1263_v40 = vsel %vm1255_vm6, %v1102_v35, %v1206_v52 }
 0x389   : > { %v1327_v41 = vmax.f32 %v1295_v47, %v1263_v40  ;;  %v1300_v40 = vld [vmem:[%s1998_s11 + $0x60] sm:$0xff] }
 0x38b   : > { %1360 = vst.msk [vmem:[%s1998_s11 + $0x38] sm:$0xff] %vm321_vm5, %v1327_v41  ;;  %v1136_v58 = vpop.xlane.xlu1 %1135  ;;  %v1246_v59 = vpop.xlane.xlu0 %1245  ;;  %v1303_v41 = vld [vmem:[%s1998_s11 + $0x78] sm:$0xff] }
 0x38c   : > { %v1283_v42 = vsel %vm1255_vm6, %v1142_v39, %v1246_v59 }
 0x38d   : > { %v1347_v46 = vmax.f32 %v1315_v53, %v1283_v42 }
 0x38f   : > { %1380 = vst.msk [vmem:[%s1998_s11 + $0xd8] sm:$0xff] %vm321_vm5, %v1347_v46  ;;  %v1200_v5 = vpop.xlane.xlu1 %1199  ;;  %v1098_v18 = vpop.xlane.xlu0 %1097 }
 0x390   : > { %v1260_v19 = vsel %vm1255_vm6, %v1096_v49, %v1200_v5 }
 0x391   : > { %v1324_v43 = vmax.f32 %v1292_v4, %v1260_v19  ;;  %v1301_v19 = vld [vmem:[%s1998_s11 + $0x68] sm:$0xff] }
 0x393   : > { %1357 = vst.msk [vmem:[%s1998_s11 + $0x20] sm:$0xff] %vm321_vm5, %v1324_v43  ;;  %v1240_v50 = vpop.xlane.xlu1 %1239  ;;  %v1138_v51 = vpop.xlane.xlu0 %1137  ;;  %v1306_v43 = vld [vmem:[%s1998_s11 + $0x90] sm:$0xff] }
 0x394   : > { %v1280_v54 = vsel %vm1255_vm6, %v1136_v58, %v1240_v50 }
 0x395   : > { %v1344_v55 = vmax.f32 %v1312_v48, %v1280_v54 }
 0x397   : > { %1377 = vst.msk [vmem:[%s1998_s11 + $0xc0] sm:$0xff] %vm321_vm5, %v1344_v55  ;;  %v1202_v57 = vpop.xlane.xlu0 %1201  ;;  %v1108_v60 = vpop.xlane.xlu1 %1107 }
 0x398   : > { %v1261_v61 = vsel %vm1255_vm6, %v1098_v18, %v1202_v57 }
 0x399   : > { %v1325_v62 = vmax.f32 %v1293_v56, %v1261_v61  ;;  %v1304_v61 = vld [vmem:[%s1998_s11 + $0x80] sm:$0xff] }
 0x39b   : > { %1358 = vst.msk [vmem:[%s1998_s11 + $0x28] sm:$0xff] %vm321_vm5, %v1325_v62  ;;  %v1242_v0 = vpop.xlane.xlu0 %1241  ;;  %v2269_v1 = vpop.xlane.xlu1 %1147  ;;  %v1307_v62 = vld [vmem:[%s1998_s11 + $0x98] sm:$0xff] }
 0x39c   : > { %v1281_v2 = vsel %vm1255_vm6, %v1138_v51, %v1242_v0 }
 0x39d   : > { %v1345_v3 = vmax.f32 %v1313_v63, %v1281_v2 }
 0x39f   : > { %1378 = vst.msk [vmem:[%s1998_s11 + $0xc8] sm:$0xff] %vm321_vm5, %v1345_v3  ;;  %v1212_v7 = vpop.xlane.xlu1 %1211  ;;  %v1110_v8 = vpop.xlane.xlu0 %1109 }
 0x3a0   : > { %v1266_v9 = vsel %vm1255_vm6, %v1108_v60, %v1212_v7 }
 0x3a1   : > { %v1330_v10 = vmax.f32 %v1298_v6, %v1266_v9 }
 0x3a3   : > { %1363 = vst.msk [vmem:[%s1998_s11 + $0x50] sm:$0xff] %vm321_vm5, %v1330_v10  ;;  %v1104_v11 = vpop.xlane.xlu1 %1103  ;;  %v2278_v12 = vpop.xlane.xlu0 %1149 }
 0x3a7   : > { %v1144_v14 = vpop.xlane.xlu1 %1143  ;;  %v1214_v15 = vpop.xlane.xlu0 %1213 }
 0x3a8   : > { %v1267_v16 = vsel %vm1255_vm6, %v1110_v8, %v1214_v15  ;;  %v1318_v8 = vld [vmem:[%s1998_s11 + $0xf0] sm:$0xff] }
 0x3a9   : > { %v1331_v17 = vmax.f32 %v1299_v13, %v1267_v16 }
 0x3ab   : > { %1364 = vst.msk [vmem:[%s1998_s11 + $0x58] sm:$0xff] %vm321_vm5, %v1331_v17  ;;  %v1208_v21 = vpop.xlane.xlu1 %1207  ;;  %v1106_v22 = vpop.xlane.xlu0 %1105 }
 0x3ac   : > { %v1264_v23 = vsel %vm1255_vm6, %v1104_v11, %v1208_v21 }
 0x3ad   : > { %v1328_v24 = vmax.f32 %v1296_v20, %v1264_v23  ;;  %v1319_v20 = vld [vmem:[%s1998_s11 + $0xf8] sm:$0xff] }
 0x3af   : > { %1361 = vst.msk [vmem:[%s1998_s11 + $0x40] sm:$0xff] %vm321_vm5, %v1328_v24  ;;  %v1248_v26 = vpop.xlane.xlu1 %1247  ;;  %v1146_v27 = vpop.xlane.xlu0 %1145 }
 0x3b0   : > { %v1284_v28 = vsel %vm1255_vm6, %v1144_v14, %v1248_v26  ;;  %v1305_v14 = vld [vmem:[%s1998_s11 + $0x88] sm:$0xff] }
 0x3b1   : > { %v1348_v29 = vmax.f32 %v1316_v25, %v1284_v28 }
 0x3b3   : > { %1381 = vst.msk [vmem:[%s1998_s11 + $0xe0] sm:$0xff] %vm321_vm5, %v1348_v29  ;;  %v1210_v31 = vpop.xlane.xlu0 %1209  ;;  %v1116_v32 = vpop.xlane.xlu1 %1115 }
 0x3b4   : > { %v1265_v34 = vsel %vm1255_vm6, %v1106_v22, %v1210_v31 }
 0x3b5   : > { %v1329_v35 = vmax.f32 %v1297_v30, %v1265_v34 }
 0x3b7   : > { %1362 = vst.msk [vmem:[%s1998_s11 + $0x48] sm:$0xff] %vm321_vm5, %v1329_v35  ;;  %v1250_v38 = vpop.xlane.xlu0 %1249  ;;  %v1220_v33 = vpop.xlane.xlu1 %1219 }
 0x3b8   : > { %v1285_v39 = vsel %vm1255_vm6, %v1146_v27, %v1250_v38  ;;  %v1270_v44 = vsel %vm1255_vm6, %v1116_v32, %v1220_v33 }
 0x3b9   : > { %v1349_v45 = vmax.f32 %v1317_v36, %v1285_v39  ;;  %v1334_v47 = vmax.f32 %v1302_v37, %v1270_v44 }
 0x3bb   : > { %1382 = vst.msk [vmem:[%s1998_s11 + $0xe8] sm:$0xff] %vm321_vm5, %v1349_v45  ;;  %1367 = vst.msk [vmem:[%s1998_s11 + $0x70] sm:$0xff] %vm321_vm5, %v1334_v47  ;;  %v1112_v49 = vpop.xlane.xlu1 %1111  ;;  %v1118_v52 = vpop.xlane.xlu0 %1117 }
 0x3bf   : > { %v1216_v53 = vpop.xlane.xlu1 %1215  ;;  %v1222_v58 = vpop.xlane.xlu0 %1221 }
 0x3c0   : > { %v1268_v59 = vsel %vm1255_vm6, %v1112_v49, %v1216_v53  ;;  %v1271_v42 = vsel %vm1255_vm6, %v1118_v52, %v1222_v58 }
 0x3c1   : > { %v1332_v46 = vmax.f32 %v1300_v40, %v1268_v59  ;;  %v1335_v4 = vmax.f32 %v1303_v41, %v1271_v42 }
 0x3c3   : > { %1365 = vst.msk [vmem:[%s1998_s11 + $0x60] sm:$0xff] %vm321_vm5, %v1332_v46  ;;  %1368 = vst.msk [vmem:[%s1998_s11 + $0x78] sm:$0xff] %vm321_vm5, %v1335_v4  ;;  %v1114_v5 = vpop.xlane.xlu0 %1113  ;;  %v1124_v18 = vpop.xlane.xlu1 %1123 }
 0x3c7   : > { %v1218_v48 = vpop.xlane.xlu0 %1217  ;;  %v1228_v50 = vpop.xlane.xlu1 %1227 }
 0x3c8   : > { %v1269_v51 = vsel %vm1255_vm6, %v1114_v5, %v1218_v48  ;;  %v1274_v54 = vsel %vm1255_vm6, %v1124_v18, %v1228_v50 }
 0x3c9   : > { %v1333_v55 = vmax.f32 %v1301_v19, %v1269_v51  ;;  %v1338_v56 = vmax.f32 %v1306_v43, %v1274_v54 }
 0x3cb   : > { %1366 = vst.msk [vmem:[%s1998_s11 + $0x68] sm:$0xff] %vm321_vm5, %v1333_v55  ;;  %1371 = vst.msk [vmem:[%s1998_s11 + $0x90] sm:$0xff] %vm321_vm5, %v1338_v56  ;;  %v1120_v57 = vpop.xlane.xlu1 %1119  ;;  %v1126_v60 = vpop.xlane.xlu0 %1125 }
 0x3cf   : > { %v1224_v63 = vpop.xlane.xlu1 %1223  ;;  %v1230_v0 = vpop.xlane.xlu0 %1229 }
 0x3d0   : > { %v1272_v2 = vsel %vm1255_vm6, %v1120_v57, %v1224_v63  ;;  %v1275_v3 = vsel %vm1255_vm6, %v1126_v60, %v1230_v0 }
 0x3d1   : > { %v1336_v6 = vmax.f32 %v1304_v61, %v1272_v2  ;;  %v1339_v7 = vmax.f32 %v1307_v62, %v1275_v3 }
 0x3d3   : > { %1369 = vst.msk [vmem:[%s1998_s11 + $0x80] sm:$0xff] %vm321_vm5, %v1336_v6  ;;  %1372 = vst.msk [vmem:[%s1998_s11 + $0x98] sm:$0xff] %vm321_vm5, %v1339_v7  ;;  %v1252_v9 = vpop.xlane.xlu1 %1251  ;;  %v1122_v10 = vpop.xlane.xlu0 %1121 }
 0x3d4   : > { %v1286_v11 = vsel %vm1255_vm6, %v2269_v1, %v1252_v9 }
 0x3d5   : > { %v1350_v13 = vmax.f32 %v1318_v8, %v1286_v11 }
 0x3d7   : > { %1383 = vst.msk [vmem:[%s1998_s11 + $0xf0] sm:$0xff] %vm321_vm5, %v1350_v13  ;;  %v1226_v15 = vpop.xlane.xlu0 %1225 }
 0x3d8   : > { %v1273_v16 = vsel %vm1255_vm6, %v1122_v10, %v1226_v15 }
 0x3d9   : > { %v1337_v17 = vmax.f32 %v1305_v14, %v1273_v16 }
 0x3db   : > { %1370 = vst.msk [vmem:[%s1998_s11 + $0x88] sm:$0xff] %vm321_vm5, %v1337_v17  ;;  %v1254_v21 = vpop.xlane.xlu0 %1253 }
 0x3dc   : > { %v1287_v22 = vsel %vm1255_vm6, %v2278_v12, %v1254_v21 }
 0x3dd   : > { %v1351_v23 = vmax.f32 %v1319_v20, %v1287_v22 }
 0x3df   : > { %1384 = vst.msk [vmem:[%s1998_s11 + $0xf8] sm:$0xff] %vm321_vm5, %v1351_v23 }
 0x3e0 PF: > { %s17_s26 = sadd.s32 1, %s1708_s26   ;;  %s2359_s24 = smov %s1704_s25 }
 0x3e1   : > { %p14_p5 = scmp.ge.s32.totalorder %s17_s26, 4   ;;  %s2360_s25 = smov %s2362_s27 }
 0x3e3   :  { %16 = sbr.rel (!%p14_p5) target bundleno = 2 (0x2), region = 85 }

</bundles_post_ra>
